<compile_context>
chip_gen: v6e
topology: v6e:2x2x1
jax: 0.10.0
libtpu: 0.0.40
codegen_flags: <defaults>
</compile_context>

<pallas_src>
import functools
import inspect

import jax
import jax.numpy as jnp
from jax import lax
from jax.experimental import pallas as pl
from jax.experimental.pallas import tpu as pltpu


def _round_up(a: int, b: int) -> int:
    return ((a + b - 1) // b) * b


try:
    _HAS_PIPELINE_MODE = (
        "pipeline_mode" in inspect.signature(pl.BlockSpec).parameters
    )
except (TypeError, ValueError):
    _HAS_PIPELINE_MODE = False


def _vmem_limit_bytes() -> int:
    # Generation-aware VMEM budget: ~80% of physical (v5e/v6e ~102 MiB,
    # v7x ~51 MiB).  Conservative fallback if the query is unavailable.
    try:
        cap = int(pltpu.get_tpu_info().vmem_capacity_bytes)
    except Exception:
        cap = 64 * 1024 * 1024
    return int(cap * 0.8)


def mlm_head_kernel(x_ref, w1_ref, b1_ref, gamma_ref, beta_ref,
                    wdec_ref, bias_ref, o_ref, h_scratch, *, eps, inv_h):
    # ---- transform (dense + GELU + LayerNorm): only once per row tile ----
    @pl.when(pl.program_id(1) == 0)
    def _():
        # dense: (tm, H) @ (H, H) + b1   (native dtype in, f32 accumulate)
        h = jnp.dot(x_ref[...], w1_ref[...],
                    preferred_element_type=jnp.float32)
        h = h + b1_ref[...].astype(jnp.float32)

        # exact (erf-based) GELU
        h = 0.5 * h * (1.0 + lax.erf(h * 0.7071067811865475))

        # LayerNorm over hidden: fused single-pass statistics
        s = jnp.sum(h, axis=-1, keepdims=True)
        sq = jnp.sum(h * h, axis=-1, keepdims=True)
        mean = s * inv_h
        var = jnp.maximum(sq * inv_h - mean * mean, 0.0)
        hn = (h - mean) * lax.rsqrt(var + eps)
        hn = hn * gamma_ref[...].astype(jnp.float32) \
             + beta_ref[...].astype(jnp.float32)
        # store once in the decoder-matmul dtype (no per-vocab-step cast)
        h_scratch[...] = hn.astype(h_scratch.dtype)

    # ---- decoder: (tm, H) @ (H, tn) + bias, streamed over vocab tiles ----
    logits = jnp.dot(h_scratch[...], wdec_ref[...],
                     preferred_element_type=jnp.float32)
    logits = logits + bias_ref[...].astype(jnp.float32)
    o_ref[...] = logits.astype(o_ref.dtype)


def mlm_head(x, w1, b1, gamma, beta, w_dec, bias, *, eps=1e-12,
             tm=512, tn=2048, compute_dtype=None, out_dtype=None):
    """x: [B, S, H]; w1: [H, H] (already transposed for x @ w1);
    b1/gamma/beta: [H]; w_dec: [H, V] (decoder.weight.T); bias: [V].
    Returns [B, S, V] logits in `out_dtype` (default: x.dtype)."""
    B, S, H = x.shape
    V = w_dec.shape[1]
    M = B * S

    out_dtype = x.dtype if out_dtype is None else jnp.dtype(out_dtype)

    x2 = x.reshape(M, H)
    if compute_dtype is not None:
        cdt = jnp.dtype(compute_dtype)
        x2 = x2.astype(cdt)
        w1 = w1.astype(cdt)
        w_dec = w_dec.astype(cdt)

    b1 = jnp.reshape(b1, (1, H)).astype(jnp.float32)
    gamma = jnp.reshape(gamma, (1, H)).astype(jnp.float32)
    beta = jnp.reshape(beta, (1, H)).astype(jnp.float32)
    bias = jnp.reshape(bias, (1, V)).astype(jnp.float32)

    # ---- row tiling: align to the dtype's sublane multiple ----
    sub = {1: 32, 2: 16}.get(jnp.dtype(x2.dtype).itemsize, 8)
    tm = int(min(tm, _round_up(M, sub)))
    tm = _round_up(tm, sub)
    if M <= tm and M > sub:
        # split into >=2 row tiles so both v7x TensorCores get work
        tm = _round_up(-(-M // 2), sub)
    M_pad = _round_up(M, tm)
    if M_pad != M:
        x2 = jnp.pad(x2, ((0, M_pad - M), (0, 0)))

    # ---- vocab tiling: always lane-dense (multiple-of-128) tiles ----
    tn = int(min(tn, _round_up(V, 128)))
    tn = _round_up(tn, 128)
    V_pad = _round_up(V, tn)
    if V_pad != V:
        # TODO(synk): in production pad the decoder weight once outside the
        # jitted forward and cache it instead of materializing a copy per call.
        w_dec = jnp.pad(w_dec, ((0, 0), (0, V_pad - V)))
        bias = jnp.pad(bias, ((0, 0), (0, V_pad - V)))

    grid = (M_pad // tm, V_pad // tn)
    kernel = functools.partial(mlm_head_kernel, eps=float(eps),
                               inv_h=float(1.0 / H))

    itemsize_in = jnp.dtype(x2.dtype).itemsize
    itemsize_w = jnp.dtype(w_dec.dtype).itemsize
    cost = pl.CostEstimate(
        flops=2 * M_pad * H * (H + V_pad),
        transcendentals=M_pad * H,
        bytes_accessed=(M_pad * H * itemsize_in
                        + H * H * itemsize_w
                        + grid[0] * H * V_pad * itemsize_w   # w_dec re-streams
                        + M_pad * V_pad * jnp.dtype(out_dtype).itemsize),
    )

    def build(use_buffer_hints: bool):
        def spec(shape, index_map, buffers=None):
            if buffers is not None and use_buffer_hints and _HAS_PIPELINE_MODE:
                return pl.BlockSpec(shape, index_map,
                                    pipeline_mode=pl.Buffered(buffers))
            return pl.BlockSpec(shape, index_map)

        # triple-buffer the decoder weight only when it is actually streamed;
        # grid-invariant transform operands get a single buffer
        wdec_buffers = 3 if grid[1] >= 3 else None

        return pl.pallas_call(
            kernel,
            out_shape=jax.ShapeDtypeStruct((M_pad, V_pad), out_dtype),
            grid_spec=pltpu.PrefetchScalarGridSpec(
                num_scalar_prefetch=0,
                grid=grid,
                in_specs=[
                    spec((tm, H), lambda i, j: (i, 0)),               # x rows
                    spec((H, H), lambda i, j: (0, 0), buffers=1),     # dense W
                    spec((1, H), lambda i, j: (0, 0), buffers=1),     # dense b
                    spec((1, H), lambda i, j: (0, 0), buffers=1),     # LN gamma
                    spec((1, H), lambda i, j: (0, 0), buffers=1),     # LN beta
                    spec((H, tn), lambda i, j: (0, j),
                         buffers=wdec_buffers),                       # dec W^T
                    spec((1, tn), lambda i, j: (0, j)),               # out bias
                ],
                out_specs=pl.BlockSpec((tm, tn), lambda i, j: (i, j)),
                scratch_shapes=[pltpu.VMEM((tm, H), w_dec.dtype)],
            ),
            compiler_params=pltpu.CompilerParams(
                dimension_semantics=("parallel", "arbitrary"),
                vmem_limit_bytes=_vmem_limit_bytes(),
            ),
            cost_estimate=cost,
        )

    args = (x2, w1, b1, gamma, beta, w_dec, bias)
    try:
        out = build(use_buffer_hints=True)(*args)
    except Exception:
        # pipeline_mode / Buffered hints unavailable or rejected: retry plain
        out = build(use_buffer_hints=False)(*args)

    return out[:M, :V].reshape(B, S, V)


def reference(x, w1, b1, gamma, beta, w_dec, bias, eps=1e-12):
    h = jnp.einsum("bsh,hk->bsk", x, w1) + jnp.reshape(b1, (-1,))
    h = 0.5 * h * (1.0 + lax.erf(h / jnp.sqrt(2.0)))
    mean = jnp.mean(h, axis=-1, keepdims=True)
    var = jnp.mean((h - mean) ** 2, axis=-1, keepdims=True)
    hn = (h - mean) * lax.rsqrt(var + eps)
    hn = hn * jnp.reshape(gamma, (-1,)) + jnp.reshape(beta, (-1,))
    return jnp.einsum("bsh,hv->bsv", hn, w_dec) + jnp.reshape(bias, (-1,))


if __name__ == "__main__":
    # Small config consistent with a BERT-style MLM head.
    batch, seq, hidden, vocab = 2, 8, 32, 64

    key = jax.random.PRNGKey(0)
    kx, kw1, kb1, kg, kbta, kwd = jax.random.split(key, 6)

    x = jax.random.normal(kx, (batch, seq, hidden), dtype=jnp.float32)

    # transform.dense: nn.Linear(hidden, hidden) -> weight (H,H), bias (H,)
    w1 = jax.random.normal(kw1, (hidden, hidden), dtype=jnp.float32) * 0.05
    b1 = jax.random.normal(kb1, (hidden,), dtype=jnp.float32) * 0.01

    # transform.LayerNorm params
    gamma = 1.0 + 0.02 * jax.random.normal(kg, (hidden,), dtype=jnp.float32)
    beta = 0.01 * jax.random.normal(kbta, (hidden,), dtype=jnp.float32)

    # decoder: nn.Linear(hidden, vocab, bias=False) -> weight (V,H);
    # kernel takes W^T (H,V).  self.bias = nn.Parameter(torch.zeros(vocab)).
    w_dec = jax.random.normal(kwd, (hidden, vocab), dtype=jnp.float32) * 0.05
    bias = jnp.zeros((vocab,), dtype=jnp.float32)

    ref = reference(x, w1, b1, gamma, beta, w_dec, bias)

    # exact-dtype path (f32 weights, f32 logits)
    out = mlm_head(x, w1, b1, gamma, beta, w_dec, bias)
    out = jax.block_until_ready(out)
    assert out.shape == (batch, seq, vocab)
    assert jnp.allclose(out, ref, atol=1e-4, rtol=1e-4), "f32 mismatch vs reference"

    # bf16-compute path (perf config: halves decoder-weight HBM streaming,
    # f32 accumulation preserved) — numerics-visible, checked loosely.
    out_bf16 = mlm_head(x, w1, b1, gamma, beta, w_dec, bias,
                        compute_dtype=jnp.bfloat16)
    out_bf16 = jax.block_until_ready(out_bf16)
    assert out_bf16.shape == (batch, seq, vocab)
    assert bool(jnp.all(jnp.isfinite(out_bf16)))
    assert jnp.allclose(out_bf16, ref, atol=1e-1, rtol=1e-1), "bf16 path diverged"

    print("KERNEL_OK")
</pallas_src>

<mosaic_0001>
module attributes {stable_mosaic.version = 11 : i64} {
  func.func @mlm_head_kernel(%arg0: i32, %arg1: i32, %arg2: memref<8x32xf32, #tpu.memory_space<vmem>>, %arg3: memref<32x32xf32, #tpu.memory_space<vmem>>, %arg4: memref<1x32xf32, #tpu.memory_space<vmem>>, %arg5: memref<1x32xf32, #tpu.memory_space<vmem>>, %arg6: memref<1x32xf32, #tpu.memory_space<vmem>>, %arg7: memref<32x128xf32, #tpu.memory_space<vmem>>, %arg8: memref<1x128xf32, #tpu.memory_space<vmem>>, %arg9: memref<8x128xf32, #tpu.memory_space<vmem>>, %arg10: memref<8x32xf32, #tpu.memory_space<vmem>>) attributes {dimension_semantics = [#tpu.dimension_semantics<parallel>, #tpu.dimension_semantics<arbitrary>], iteration_bounds = array<i64: 2, 1>, scalar_prefetch = 0 : i64, scratch_operands = 1 : i64, tpu.core_type = #tpu.core_type<tc>, window_params = [{transform_indices = @transform_0, window_bounds = array<i64: 8, 32>}, {pipeline_mode = #tpu.pipeline_mode<synchronous>, transform_indices = @transform_1, window_bounds = array<i64: 32, 32>}, {pipeline_mode = #tpu.pipeline_mode<synchronous>, transform_indices = @transform_2, window_bounds = array<i64: 1, 32>}, {pipeline_mode = #tpu.pipeline_mode<synchronous>, transform_indices = @transform_3, window_bounds = array<i64: 1, 32>}, {pipeline_mode = #tpu.pipeline_mode<synchronous>, transform_indices = @transform_4, window_bounds = array<i64: 1, 32>}, {transform_indices = @transform_5, window_bounds = array<i64: 32, 128>}, {transform_indices = @transform_6, window_bounds = array<i64: 1, 128>}, {transform_indices = @transform_7, window_bounds = array<i64: 8, 128>}]} {
    %c0_i32 = arith.constant 0 : i32
    %0 = arith.cmpi eq, %arg1, %c0_i32 : i32
    %1 = arith.extui %0 : i1 to i32
    %c0_i32_0 = arith.constant 0 : i32
    %2 = arith.cmpi ne, %1, %c0_i32_0 : i32
    scf.if %2 {
      %c0_8 = arith.constant 0 : index
      %c0_9 = arith.constant 0 : index
      %10 = vector.load %arg2[%c0_8, %c0_9] : memref<8x32xf32, #tpu.memory_space<vmem>>, vector<8x32xf32>
      %c0_10 = arith.constant 0 : index
      %c0_11 = arith.constant 0 : index
      %11 = vector.load %arg3[%c0_10, %c0_11] : memref<32x32xf32, #tpu.memory_space<vmem>>, vector<32x32xf32>
      %cst_12 = arith.constant dense<0.000000e+00> : vector<8x32xf32>
      %12 = tpu.matmul %10, %11, %cst_12 {dimension_numbers = #tpu.dot_dimension_numbers<[1], [0], [0], [1], [0, 0, 1, 1], [], []>} : vector<8x32xf32>, vector<32x32xf32>, vector<8x32xf32> -> vector<8x32xf32>
      %c0_13 = arith.constant 0 : index
      %c0_14 = arith.constant 0 : index
      %13 = vector.load %arg4[%c0_13, %c0_14] : memref<1x32xf32, #tpu.memory_space<vmem>>, vector<1x32xf32>
      %14 = vector.broadcast %13 : vector<1x32xf32> to vector<8x32xf32>
      %15 = arith.addf %12, %14 : vector<8x32xf32>
      %cst_15 = arith.constant 5.000000e-01 : f32
      %16 = vector.broadcast %cst_15 : f32 to vector<8x32xf32>
      %17 = arith.mulf %16, %15 : vector<8x32xf32>
      %cst_16 = arith.constant 0.707106769 : f32
      %18 = vector.broadcast %cst_16 : f32 to vector<8x32xf32>
      %19 = arith.mulf %15, %18 : vector<8x32xf32>
      %20 = math.erf %19 : vector<8x32xf32>
      %cst_17 = arith.constant 1.000000e+00 : f32
      %21 = vector.broadcast %cst_17 : f32 to vector<8x32xf32>
      %22 = arith.addf %21, %20 : vector<8x32xf32>
      %23 = arith.mulf %17, %22 : vector<8x32xf32>
      %cst_18 = arith.constant dense<0.000000e+00> : vector<8xf32>
      %24 = vector.multi_reduction <add>, %23, %cst_18 [1] : vector<8x32xf32> to vector<8xf32>
      %25 = vector.shape_cast %24 : vector<8xf32> to vector<8x1xf32>
      %26 = arith.mulf %23, %23 : vector<8x32xf32>
      %cst_19 = arith.constant dense<0.000000e+00> : vector<8xf32>
      %27 = vector.multi_reduction <add>, %26, %cst_19 [1] : vector<8x32xf32> to vector<8xf32>
      %28 = vector.shape_cast %27 : vector<8xf32> to vector<8x1xf32>
      %cst_20 = arith.constant 3.125000e-02 : f32
      %29 = vector.broadcast %cst_20 : f32 to vector<8x1xf32>
      %30 = arith.mulf %25, %29 : vector<8x1xf32>
      %cst_21 = arith.constant 3.125000e-02 : f32
      %31 = vector.broadcast %cst_21 : f32 to vector<8x1xf32>
      %32 = arith.mulf %28, %31 : vector<8x1xf32>
      %33 = arith.mulf %30, %30 : vector<8x1xf32>
      %34 = arith.subf %32, %33 : vector<8x1xf32>
      %cst_22 = arith.constant 0.000000e+00 : f32
      %35 = vector.broadcast %cst_22 : f32 to vector<8x1xf32>
      %36 = arith.maximumf %34, %35 : vector<8x1xf32>
      %37 = vector.broadcast %30 : vector<8x1xf32> to vector<8x32xf32>
      %38 = arith.subf %23, %37 : vector<8x32xf32>
      %cst_23 = arith.constant 9.99999996E-13 : f32
      %39 = vector.broadcast %cst_23 : f32 to vector<8x1xf32>
      %40 = arith.addf %36, %39 : vector<8x1xf32>
      %41 = math.rsqrt %40 : vector<8x1xf32>
      %42 = vector.broadcast %41 : vector<8x1xf32> to vector<8x32xf32>
      %43 = arith.mulf %38, %42 : vector<8x32xf32>
      %c0_24 = arith.constant 0 : index
      %c0_25 = arith.constant 0 : index
      %44 = vector.load %arg5[%c0_24, %c0_25] : memref<1x32xf32, #tpu.memory_space<vmem>>, vector<1x32xf32>
      %45 = vector.broadcast %44 : vector<1x32xf32> to vector<8x32xf32>
      %46 = arith.mulf %43, %45 : vector<8x32xf32>
      %c0_26 = arith.constant 0 : index
      %c0_27 = arith.constant 0 : index
      %47 = vector.load %arg6[%c0_26, %c0_27] : memref<1x32xf32, #tpu.memory_space<vmem>>, vector<1x32xf32>
      %48 = vector.broadcast %47 : vector<1x32xf32> to vector<8x32xf32>
      %49 = arith.addf %46, %48 : vector<8x32xf32>
      %c0_28 = arith.constant 0 : index
      %c0_29 = arith.constant 0 : index
      %50 = vector.load %arg10[%c0_28, %c0_29] : memref<8x32xf32, #tpu.memory_space<vmem>>, vector<8x32xf32>
      tpu.vector_store %arg10[%c0_28, %c0_29], %49 {strides = array<i32>} : memref<8x32xf32, #tpu.memory_space<vmem>>, vector<8x32xf32>,
    } else {
    }
    %c0 = arith.constant 0 : index
    %c0_1 = arith.constant 0 : index
    %3 = vector.load %arg10[%c0, %c0_1] : memref<8x32xf32, #tpu.memory_space<vmem>>, vector<8x32xf32>
    %c0_2 = arith.constant 0 : index
    %c0_3 = arith.constant 0 : index
    %4 = vector.load %arg7[%c0_2, %c0_3] : memref<32x128xf32, #tpu.memory_space<vmem>>, vector<32x128xf32>
    %cst = arith.constant dense<0.000000e+00> : vector<8x128xf32>
    %5 = tpu.matmul %3, %4, %cst {dimension_numbers = #tpu.dot_dimension_numbers<[1], [0], [0], [1], [0, 0, 1, 1], [], []>} : vector<8x32xf32>, vector<32x128xf32>, vector<8x128xf32> -> vector<8x128xf32>
    %c0_4 = arith.constant 0 : index
    %c0_5 = arith.constant 0 : index
    %6 = vector.load %arg8[%c0_4, %c0_5] : memref<1x128xf32, #tpu.memory_space<vmem>>, vector<1x128xf32>
    %7 = vector.broadcast %6 : vector<1x128xf32> to vector<8x128xf32>
    %8 = arith.addf %5, %7 : vector<8x128xf32>
    %c0_6 = arith.constant 0 : index
    %c0_7 = arith.constant 0 : index
    %9 = vector.load %arg9[%c0_6, %c0_7] : memref<8x128xf32, #tpu.memory_space<vmem>>, vector<8x128xf32>
    tpu.vector_store %arg9[%c0_6, %c0_7], %8 {strides = array<i32>} : memref<8x128xf32, #tpu.memory_space<vmem>>, vector<8x128xf32>,
    return
  }
  func.func @transform_0(%arg0: i32, %arg1: i32) -> (i32, i32) {
    %c0_i32 = arith.constant 0 : i32
    %c0_i32_0 = arith.constant 0 : i32
    return %arg0, %c0_i32 : i32, i32
  }
  func.func @transform_1(%arg0: i32, %arg1: i32) -> (i32, i32) {
    %c0_i32 = arith.constant 0 : i32
    %c0_i32_0 = arith.constant 0 : i32
    %c0_i32_1 = arith.constant 0 : i32
    return %c0_i32, %c0_i32_0 : i32, i32
  }
  func.func @transform_2(%arg0: i32, %arg1: i32) -> (i32, i32) {
    %c0_i32 = arith.constant 0 : i32
    %c0_i32_0 = arith.constant 0 : i32
    %c0_i32_1 = arith.constant 0 : i32
    return %c0_i32, %c0_i32_0 : i32, i32
  }
  func.func @transform_3(%arg0: i32, %arg1: i32) -> (i32, i32) {
    %c0_i32 = arith.constant 0 : i32
    %c0_i32_0 = arith.constant 0 : i32
    %c0_i32_1 = arith.constant 0 : i32
    return %c0_i32, %c0_i32_0 : i32, i32
  }
  func.func @transform_4(%arg0: i32, %arg1: i32) -> (i32, i32) {
    %c0_i32 = arith.constant 0 : i32
    %c0_i32_0 = arith.constant 0 : i32
    %c0_i32_1 = arith.constant 0 : i32
    return %c0_i32, %c0_i32_0 : i32, i32
  }
  func.func @transform_5(%arg0: i32, %arg1: i32) -> (i32, i32) {
    %c0_i32 = arith.constant 0 : i32
    %c0_i32_0 = arith.constant 0 : i32
    return %c0_i32, %arg1 : i32, i32
  }
  func.func @transform_6(%arg0: i32, %arg1: i32) -> (i32, i32) {
    %c0_i32 = arith.constant 0 : i32
    %c0_i32_0 = arith.constant 0 : i32
    return %c0_i32, %arg1 : i32, i32
  }
  func.func @transform_7(%arg0: i32, %arg1: i32) -> (i32, i32) {
    %c0_i32 = arith.constant 0 : i32
    return %arg0, %arg1 : i32, i32
  }
}

module attributes {stable_mosaic.version = 11 : i64} {
  func.func @mlm_head_kernel(%arg0: i32, %arg1: i32, %arg2: memref<8x32xf32, #tpu.memory_space<vmem>>, %arg3: memref<32x32xf32, #tpu.memory_space<vmem>>, %arg4: memref<1x32xf32, #tpu.memory_space<vmem>>, %arg5: memref<1x32xf32, #tpu.memory_space<vmem>>, %arg6: memref<1x32xf32, #tpu.memory_space<vmem>>, %arg7: memref<32x128xf32, #tpu.memory_space<vmem>>, %arg8: memref<1x128xf32, #tpu.memory_space<vmem>>, %arg9: memref<8x128xf32, #tpu.memory_space<vmem>>, %arg10: memref<8x32xf32, #tpu.memory_space<vmem>>) attributes {dimension_semantics = [#tpu.dimension_semantics<parallel>, #tpu.dimension_semantics<arbitrary>], iteration_bounds = array<i64: 2, 1>, scalar_prefetch = 0 : i64, scratch_operands = 1 : i64, tpu.core_type = #tpu.core_type<tc>, window_params = [{transform_indices = @transform_0, window_bounds = array<i64: 8, 32>}, {pipeline_mode = #tpu.pipeline_mode<synchronous>, transform_indices = @transform_1, window_bounds = array<i64: 32, 32>}, {pipeline_mode = #tpu.pipeline_mode<synchronous>, transform_indices = @transform_2, window_bounds = array<i64: 1, 32>}, {pipeline_mode = #tpu.pipeline_mode<synchronous>, transform_indices = @transform_3, window_bounds = array<i64: 1, 32>}, {pipeline_mode = #tpu.pipeline_mode<synchronous>, transform_indices = @transform_4, window_bounds = array<i64: 1, 32>}, {transform_indices = @transform_5, window_bounds = array<i64: 32, 128>}, {transform_indices = @transform_6, window_bounds = array<i64: 1, 128>}, {transform_indices = @transform_7, window_bounds = array<i64: 8, 128>}]} {
    %c0_i32 = arith.constant 0 : i32
    %0 = arith.cmpi eq, %arg1, %c0_i32 : i32
    %1 = arith.extui %0 : i1 to i32
    %c0_i32_0 = arith.constant 0 : i32
    %2 = arith.cmpi ne, %1, %c0_i32_0 : i32
    scf.if %2 {
      %c0_8 = arith.constant 0 : index
      %c0_9 = arith.constant 0 : index
      %10 = vector.load %arg2[%c0_8, %c0_9] : memref<8x32xf32, #tpu.memory_space<vmem>>, vector<8x32xf32>
      %c0_10 = arith.constant 0 : index
      %c0_11 = arith.constant 0 : index
      %11 = vector.load %arg3[%c0_10, %c0_11] : memref<32x32xf32, #tpu.memory_space<vmem>>, vector<32x32xf32>
      %cst_12 = arith.constant dense<0.000000e+00> : vector<8x32xf32>
      %12 = tpu.matmul %10, %11, %cst_12 {dimension_numbers = #tpu.dot_dimension_numbers<[1], [0], [0], [1], [0, 0, 1, 1], [], []>} : vector<8x32xf32>, vector<32x32xf32>, vector<8x32xf32> -> vector<8x32xf32>
      %c0_13 = arith.constant 0 : index
      %c0_14 = arith.constant 0 : index
      %13 = vector.load %arg4[%c0_13, %c0_14] : memref<1x32xf32, #tpu.memory_space<vmem>>, vector<1x32xf32>
      %14 = vector.broadcast %13 : vector<1x32xf32> to vector<8x32xf32>
      %15 = arith.addf %12, %14 : vector<8x32xf32>
      %cst_15 = arith.constant 5.000000e-01 : f32
      %16 = vector.broadcast %cst_15 : f32 to vector<8x32xf32>
      %17 = arith.mulf %16, %15 : vector<8x32xf32>
      %cst_16 = arith.constant 0.707106769 : f32
      %18 = vector.broadcast %cst_16 : f32 to vector<8x32xf32>
      %19 = arith.mulf %15, %18 : vector<8x32xf32>
      %20 = math.erf %19 : vector<8x32xf32>
      %cst_17 = arith.constant 1.000000e+00 : f32
      %21 = vector.broadcast %cst_17 : f32 to vector<8x32xf32>
      %22 = arith.addf %21, %20 : vector<8x32xf32>
      %23 = arith.mulf %17, %22 : vector<8x32xf32>
      %cst_18 = arith.constant dense<0.000000e+00> : vector<8xf32>
      %24 = vector.multi_reduction <add>, %23, %cst_18 [1] : vector<8x32xf32> to vector<8xf32>
      %25 = vector.shape_cast %24 : vector<8xf32> to vector<8x1xf32>
      %26 = arith.mulf %23, %23 : vector<8x32xf32>
      %cst_19 = arith.constant dense<0.000000e+00> : vector<8xf32>
      %27 = vector.multi_reduction <add>, %26, %cst_19 [1] : vector<8x32xf32> to vector<8xf32>
      %28 = vector.shape_cast %27 : vector<8xf32> to vector<8x1xf32>
      %cst_20 = arith.constant 3.125000e-02 : f32
      %29 = vector.broadcast %cst_20 : f32 to vector<8x1xf32>
      %30 = arith.mulf %25, %29 : vector<8x1xf32>
      %cst_21 = arith.constant 3.125000e-02 : f32
      %31 = vector.broadcast %cst_21 : f32 to vector<8x1xf32>
      %32 = arith.mulf %28, %31 : vector<8x1xf32>
      %33 = arith.mulf %30, %30 : vector<8x1xf32>
      %34 = arith.subf %32, %33 : vector<8x1xf32>
      %cst_22 = arith.constant 0.000000e+00 : f32
      %35 = vector.broadcast %cst_22 : f32 to vector<8x1xf32>
      %36 = arith.maximumf %34, %35 : vector<8x1xf32>
      %37 = vector.broadcast %30 : vector<8x1xf32> to vector<8x32xf32>
      %38 = arith.subf %23, %37 : vector<8x32xf32>
      %cst_23 = arith.constant 9.99999996E-13 : f32
      %39 = vector.broadcast %cst_23 : f32 to vector<8x1xf32>
      %40 = arith.addf %36, %39 : vector<8x1xf32>
      %41 = math.rsqrt %40 : vector<8x1xf32>
      %42 = vector.broadcast %41 : vector<8x1xf32> to vector<8x32xf32>
      %43 = arith.mulf %38, %42 : vector<8x32xf32>
      %c0_24 = arith.constant 0 : index
      %c0_25 = arith.constant 0 : index
      %44 = vector.load %arg5[%c0_24, %c0_25] : memref<1x32xf32, #tpu.memory_space<vmem>>, vector<1x32xf32>
      %45 = vector.broadcast %44 : vector<1x32xf32> to vector<8x32xf32>
      %46 = arith.mulf %43, %45 : vector<8x32xf32>
      %c0_26 = arith.constant 0 : index
      %c0_27 = arith.constant 0 : index
      %47 = vector.load %arg6[%c0_26, %c0_27] : memref<1x32xf32, #tpu.memory_space<vmem>>, vector<1x32xf32>
      %48 = vector.broadcast %47 : vector<1x32xf32> to vector<8x32xf32>
      %49 = arith.addf %46, %48 : vector<8x32xf32>
      %c0_28 = arith.constant 0 : index
      %c0_29 = arith.constant 0 : index
      %50 = vector.load %arg10[%c0_28, %c0_29] : memref<8x32xf32, #tpu.memory_space<vmem>>, vector<8x32xf32>
      tpu.vector_store %arg10[%c0_28, %c0_29], %49 {strides = array<i32>} : memref<8x32xf32, #tpu.memory_space<vmem>>, vector<8x32xf32>,
    } else {
    }
    %c0 = arith.constant 0 : index
    %c0_1 = arith.constant 0 : index
    %3 = vector.load %arg10[%c0, %c0_1] : memref<8x32xf32, #tpu.memory_space<vmem>>, vector<8x32xf32>
    %c0_2 = arith.constant 0 : index
    %c0_3 = arith.constant 0 : index
    %4 = vector.load %arg7[%c0_2, %c0_3] : memref<32x128xf32, #tpu.memory_space<vmem>>, vector<32x128xf32>
    %cst = arith.constant dense<0.000000e+00> : vector<8x128xf32>
    %5 = tpu.matmul %3, %4, %cst {dimension_numbers = #tpu.dot_dimension_numbers<[1], [0], [0], [1], [0, 0, 1, 1], [], []>} : vector<8x32xf32>, vector<32x128xf32>, vector<8x128xf32> -> vector<8x128xf32>
    %c0_4 = arith.constant 0 : index
    %c0_5 = arith.constant 0 : index
    %6 = vector.load %arg8[%c0_4, %c0_5] : memref<1x128xf32, #tpu.memory_space<vmem>>, vector<1x128xf32>
    %7 = vector.broadcast %6 : vector<1x128xf32> to vector<8x128xf32>
    %8 = arith.addf %5, %7 : vector<8x128xf32>
    %c0_6 = arith.constant 0 : index
    %c0_7 = arith.constant 0 : index
    %9 = vector.load %arg9[%c0_6, %c0_7] : memref<8x128xf32, #tpu.memory_space<vmem>>, vector<8x128xf32>
    tpu.vector_store %arg9[%c0_6, %c0_7], %8 {strides = array<i32>} : memref<8x128xf32, #tpu.memory_space<vmem>>, vector<8x128xf32>,
    return
  }
  func.func @transform_0(%arg0: i32, %arg1: i32) -> (i32, i32) {
    %c0_i32 = arith.constant 0 : i32
    %c0_i32_0 = arith.constant 0 : i32
    return %arg0, %c0_i32 : i32, i32
  }
  func.func @transform_1(%arg0: i32, %arg1: i32) -> (i32, i32) {
    %c0_i32 = arith.constant 0 : i32
    %c0_i32_0 = arith.constant 0 : i32
    %c0_i32_1 = arith.constant 0 : i32
    return %c0_i32, %c0_i32_0 : i32, i32
  }
  func.func @transform_2(%arg0: i32, %arg1: i32) -> (i32, i32) {
    %c0_i32 = arith.constant 0 : i32
    %c0_i32_0 = arith.constant 0 : i32
    %c0_i32_1 = arith.constant 0 : i32
    return %c0_i32, %c0_i32_0 : i32, i32
  }
  func.func @transform_3(%arg0: i32, %arg1: i32) -> (i32, i32) {
    %c0_i32 = arith.constant 0 : i32
    %c0_i32_0 = arith.constant 0 : i32
    %c0_i32_1 = arith.constant 0 : i32
    return %c0_i32, %c0_i32_0 : i32, i32
  }
  func.func @transform_4(%arg0: i32, %arg1: i32) -> (i32, i32) {
    %c0_i32 = arith.constant 0 : i32
    %c0_i32_0 = arith.constant 0 : i32
    %c0_i32_1 = arith.constant 0 : i32
    return %c0_i32, %c0_i32_0 : i32, i32
  }
  func.func @transform_5(%arg0: i32, %arg1: i32) -> (i32, i32) {
    %c0_i32 = arith.constant 0 : i32
    %c0_i32_0 = arith.constant 0 : i32
    return %c0_i32, %arg1 : i32, i32
  }
  func.func @transform_6(%arg0: i32, %arg1: i32) -> (i32, i32) {
    %c0_i32 = arith.constant 0 : i32
    %c0_i32_0 = arith.constant 0 : i32
    return %c0_i32, %arg1 : i32, i32
  }
  func.func @transform_7(%arg0: i32, %arg1: i32) -> (i32, i32) {
    %c0_i32 = arith.constant 0 : i32
    return %arg0, %arg1 : i32, i32
  }
}

</mosaic_0001>

<bundles_post_ra>
// kernel: tpu_custom_call.1
= control target key start
LH: loop header
LB: loop body
LE: loop exit
PB: predicated region body
PF: predicated region fallthrough
CT: control target
= control target key end

     0   :  { %s1262_s0 = inlined_call_operand.hbm [shape: f32[16,32], index: 0, kind: input, shape index: {}]   ;;  %s1263_s1 = inlined_call_operand.hbm [shape: f32[32,32], index: 1, kind: input, shape index: {}]   ;;  %s1264_s2 = inlined_call_operand.vmem [shape: f32[1,32], index: 2, kind: input, shape index: {}]   ;;  %s1265_s3 = inlined_call_operand.vmem [shape: f32[1,32], index: 3, kind: input, shape index: {}]   ;;  %s1266_s4 = inlined_call_operand.vmem [shape: f32[1,32], index: 4, kind: input, shape index: {}]   ;;  %s1267_s5 = inlined_call_operand.hbm [shape: f32[32,128], index: 5, kind: input, shape index: {}]   ;;  %s1268_s6 = inlined_call_operand.vmem [shape: f32[1,128], index: 6, kind: input, shape index: {}]   ;;  %s1269_s7 = inlined_call_operand.hbm [shape: f32[16,128], index: 7, kind: output, shape index: {}]  }
   0x1   :  { %1274 = sst [smem:[#allocation14_spill]] %s1263_s1 }
   0x2   :  { %1275 = sst [smem:[#allocation15_spill]] %s1267_s5 }
   0x3   :  { %12 = vsyncpa [#allocation4], 0 }
   0x4   :  { %14 = vsyncpa [#allocation4 + $0x1], 0 }
   0x5   :  { %15 = vsyncpa [#allocation7], 0 }
   0x6   :  { %16 = vsyncpa [#allocation5], 0 }
   0x7   :  { %18 = vsyncpa [#allocation5 + $0x1], 0  ;;  %s1061_s24 = smov 0   ;;  %s1063_s25 = smov 0  }
   0x8   :  { %s1065_s26 = smov 0   ;;  %s1067_s27 = smov 0  }
   0x9   :  { %s1069_s28 = smov 0   ;;  %s1071_s29 = smov 0  }
   0xa LB: > { %s700_s30 = sadd.s32 4294967295, %s1011_s29   ;;  %s701_s8 = sadd.s32 4294967294, %s1011_s29   ;;  %s1011_s29 = sphi %s1071_s29, %s24_s29   ;;  %s1007_s28 = sphi %s1069_s28, %s1296_s28   ;;  %s1003_s27 = sphi %s1067_s27, %s1295_s27   ;;  %s999_s26 = sphi %s1065_s26, %s1294_s26   ;;  %s995_s25 = sphi %s1063_s25, %s1293_s25   ;;  %s991_s24 = sphi %s1061_s24, %s1292_s24  }
   0xb   : > { %p56_p0 = scmp.ne.s32.totalorder %s995_s25, %s991_s24  ;;  %p1095_p1 = scmp.eq.s32.totalorder %s700_s30, 0 }
   0xc   : > { %p1099_p2 = scmp.eq.s32.totalorder %s700_s30, 1  ;;  %p224_p3 = scmp.eq.s32.totalorder %s701_s8, 1 }
   0xd   : > { %s1276_s9 = scalar_select %p1095_p1, 1, 0 }
   0xe   : > { %p1105_p4 = por %p1095_p1, %p56_p0  ;;  %p702_p5 = scmp.ge.s32.totalorder %s1011_s29, 1 }
   0xf   : > { %p1110_p6 = por %p224_p3, %p56_p0  ;;  %p231_p7 = scmp.lt.s32.totalorder %s1011_s29, 3 }
  0x10   : > { %s1278_s11 = scalar_select %p1105_p4, 1, 0 }
  0x11   : > { %s1279_s12 = scalar_select %p1110_p6, 1, 0 }
  0x12   : > { %p1115_p8 = pnand %p702_p5, %p231_p7  ;;  %s1013_s14 = smov [#allocation6]  }
  0x13   : > { %s243_s15 = sshll.u32 %s1013_s14, 4  ;;  %s1014_s17 = smov [#allocation8]   ;;  %s244_s15 = int_to_ptr.vmem [resolvable:$true] %s243_s15 }
  0x14   : > { %p768_p9 = pneg %p1115_p8  ;;  %s267_s18 = sshll.u32 %s1014_s17, 4  ;;  %s268_s18 = int_to_ptr.vmem [resolvable:$true] %s267_s18 }
  0x15   : > { %s858_s19 = scalar_lea.vmem %s244_s15, 512  ;;  %p866_p5 = scmp.lt.s32.totalorder %s244_s15, %s244_s15 }
  0x16   : > { %p1124_p11 = pnand %p768_p9, %p1095_p1  ;;  %p859_p13 = scmp.ne.s32.totalorder %s244_s15, %s858_s19 }
  0x17   : > { %p867_p7 = scmp.lt.s32.totalorder %s858_s19, %s858_s19 }
  0x18   : > { %p849_p12 = pneg %p1124_p11 }
  0x19   : > { %p868_p10 = por %p867_p7, %p866_p5 }
  0x1a   : > { %p861_p0 = pnand %p859_p13, %p849_p12 }
  0x1c   : > { %p862_p3 = pneg %p861_p0 }
  0x1e   : > { %p869_p9 = pnand %p868_p10, %p862_p3 }
  0x20   : > { %872 = shalt.err (!%p869_p9)
}
  0x21   : > { %s1015_s20 = smov 128   ;;  %s1016_s21 = smov 8  }
  0x22   : > { %s1282_s1 = sld [smem:[#allocation14_spill]]  ;;  %s884_s30 = scalar_lea.vmem %s268_s18, 512 }
  0x23   : > { %p885_p6 = scmp.ne.s32.totalorder %s268_s18, %s884_s30  ;;  %p892_p1 = scmp.lt.s32.totalorder %s268_s18, %s268_s18 }
  0x24   : > { %p893_p4 = scmp.lt.s32.totalorder %s884_s30, %s884_s30 }
  0x25   : > { %p887_p13 = pnand %p885_p6, %p849_p12 }
  0x26   : > { %p894_p5 = por %p893_p4, %p892_p1 }
  0x27   : > { %p888_p0 = pneg %p887_p13 }
  0x28   : > { %771 = dma.hbm_to_vmem [thread:$0]  (!%p1124_p11), %s1282_s1, 512, %s244_s15, [#allocation7], %s1015_s20, %s1015_s20, %s1016_s21  }
  0x29   : > { %p895_p10 = pnand %p894_p5, %p888_p0 }
  0x2b   : > { %898 = shalt.err (!%p895_p10)
}
  0x2c   : > { %s1283_s5 = sld [smem:[#allocation15_spill]]  ;;  %s36_s15 = sadd.s32 1, %s1007_s28 }
  0x2d   : > { %s43_s17 = sadd.s32 1, %s999_s26  ;;  %p38_p1 = scmp.ge.s32.totalorder %s36_s15, 2 }
  0x2e   : > { %p50_p4 = scmp.ne.s32.totalorder %s999_s26, %s995_s25  ;;  %p51_p6 = scmp.eq.s32.totalorder %s1011_s29, 0 }
  0x2f   : > { %p785_p12 = scmp.lt.s32.totalorder %s1011_s29, 2  ;;  %s1298_s15 = smov (%p38_p1, %s36_s15), 0 }
  0x30   : > { %1284 = sst [smem:[#allocation13_spill]] %s1298_s15  ;;  %p52_p3 = por %p51_p6, %p50_p4 }
  0x31   : > { %p1156_p7 = por %p1099_p2, %p50_p4  ;;  %s40_s19 = ssub.s32 %s1007_s28, %s1298_s15 }
  0x32   : > { %774 = dma.hbm_to_vmem [thread:$0]  (!%p1124_p11), %s1283_s5, 512, %s268_s18, [#allocation7], %s1015_s20, %s1015_s20, %s1016_s21  }
  0x33   : > { %s287_s22 = sand.u32 1, %s999_s26   ;;  %p41_p9 = scmp.eq.s32.totalorder %s40_s19, 0 }
  0x34   : > { %s707_s18 = sshll.u32 %s287_s22, 3  ;;  %s708_s20 = sshll.u32 %s1007_s28, 7 }
  0x35   : > { %s1165_s21 = scalar_select %p41_p9, %s999_s26, %s43_s17  }
  0x36   : > { %s296_s8 = scalar_lea.hbm %s1262_s0, %s708_s20  ;;  %s291_s14 = scalar_lea.vmem [#allocation3], %s707_s18 }
  0x37   : > { %s298_s1 = sshll.u32 %s291_s14, 4  ;;  %p1172_p11 = pnand %p785_p12, %p52_p3  ;;  %s299_s1 = int_to_ptr.vmem [resolvable:$true] %s298_s1 }
  0x38   : > { %s288_s5 = scalar_lea.sflag [#allocation4], %s287_s22  ;;  %s912_s19 = scalar_lea.vmem %s299_s1, 128 }
  0x39   : > { %p901_p2 = pneg %p1172_p11  ;;  %p913_p13 = scmp.ne.s32.totalorder %s299_s1, %s912_s19 }
  0x3a   : > { %s1017_s17 = smov [#allocation3]  }
  0x3b   : > { %p915_p0 = pnand %p913_p13, %p901_p2  ;;  %s917_s15 = sshll.u32 %s1017_s17, 4  ;;  %s918_s15 = int_to_ptr.vmem [resolvable:$false] %s917_s15 }
  0x3c   : > { %s919_s20 = scalar_lea.vmem %s918_s15, 256  ;;  %p920_p10 = scmp.lt.s32.totalorder %s299_s1, %s918_s15 }
  0x3d   : > { %p916_p5 = pneg %p915_p0  ;;  %p921_p1 = scmp.lt.s32.totalorder %s919_s20, %s912_s19 }
  0x3f   : > { %p922_p4 = por %p921_p1, %p920_p10 }
  0x41   : > { %p923_p6 = pnand %p922_p4, %p916_p5 }
  0x43   : > { %926 = shalt.err (!%p923_p6)
}
  0x44   : > { %778 = dma.hbm_to_vmem [thread:$0]  (!%p1172_p11), %s296_s8, 128, %s299_s1, %s288_s5  }
  0x45   : > { %307 = sbr.rel (%p1115_p8) target bundleno = 690 (0x2b2), region = 48  ;;  %s1183_s22 = sand.u32 (!%p1115_p8), 1, %s995_s25  }
  0x46   : > { %s710_s18 = sshll.u32 (!%p1115_p8), %s1183_s22, 3  ;;  %s310_s23 = scalar_lea.sflag (!%p1115_p8), [#allocation4], %s1183_s22 }
  0x47   : > { %s313_s15 = scalar_lea.vmem (!%p1115_p8), [#allocation3], %s710_s18  ;;  %p1287_p12 = scmp.ne.s32.totalorder (!%p1115_p8), %s1278_s11, 0 }
  0x4a   : > { %978 = dma.done.wait (%p1287_p12), %s310_s23, 128  }
  0x4b   : > { %980 = vsyncadd (%p1287_p12), %s310_s23, 4294967168  ;;  %p1288_p3 = scmp.ne.s32.totalorder %s1276_s9, 0 }
  0x4d   : > { %982 = dma.done.wait (%p1288_p3), [#allocation7], 1024  }
  0x4e   : > { %984 = vsyncadd (%p1288_p3), [#allocation7], 4294966272  ;;  %v1018_v0 = vmov 0.0   ;;  %vm1019_vm0 = vmmov 0   ;;  %v366_v1 = vld [vmem:[#allocation6 + $0x18] sm:$0xff]  ;;  %v365_v2 = vld [vmem:[#allocation6 + $0x10] sm:$0xff] }
  0x4f   : > { %734 = vmatprep.subr.mxu0 %v1018_v0  ;;  %742 = vmatprep.mubr.msk.f32.mxu0 %vm1019_vm0, %v1018_v0  ;;  %v364_v3 = vld [vmem:[#allocation6 + $0x8] sm:$0xff]  ;;  %v363_v4 = vld [vmem:[#allocation6] sm:$0xff]  ;;  %v362_v5 = vld [vmem:[%s313_s15] sm:$0xff]  ;;  %vm374_vm1 = vcmask 261120   ;;  %s721_s10 = sshll.u32 %s1003_s27, 7  ;;  %s354_s19 = scalar_lea.vmem [#allocation9], %s710_s18 }
  0x50   : > { %745 = vmatprep.subr.mxu1 %v1018_v0  ;;  %753 = vmatprep.mubr.msk.f32.mxu1 %vm1019_vm0, %v1018_v0  ;;  %v714_v6 = vld [vmem:[%s1264_s2] ss:$0 sm:$0xff]  ;;  %v490_v18 = vld [vmem:[#allocation8 + $0x18] sm:$0xff]  ;;  %v489_v19 = vld [vmem:[#allocation8 + $0x10] sm:$0xff]  ;;  %s588_s17 = sshll.u32 %s354_s19, 4  ;;  %s1220_s15 = scalar_lea.hbm %s1269_s7, %s721_s10  ;;  %s589_s17 = int_to_ptr.vmem [resolvable:$true] %s588_s17 }
  0x51   : > { %735 = vmatpush3.msra.mxu0 %v366_v1  ;;  %746 = vmatpush3.msra.mxu1 %v490_v18  ;;  %v488_v20 = vld [vmem:[#allocation8 + $0x8] sm:$0xff]  ;;  %v487_v21 = vld [vmem:[#allocation8] sm:$0xff]  ;;  %s574_s1 = scalar_lea.sflag [#allocation5], %s1183_s22  ;;  %s927_s5 = scalar_lea.vmem %s589_s17, 128 }
  0x52   : > { %736 = vmatprep.subr.mxu0 %v1018_v0  ;;  %747 = vmatprep.subr.mxu1 %v1018_v0  ;;  %v716_v32 = vld [vmem:[%s1265_s3] ss:$0 sm:$0xff]  ;;  %p928_p8 = scmp.ne.s32.totalorder %s589_s17, %s927_s5  ;;  %s1020_s27 = smov [#allocation9]  }
  0x53   : > { %737 = vmatpush3.msra.mxu0 %v365_v2  ;;  %748 = vmatpush3.msra.mxu1 %v489_v19  ;;  %v717_v34 = vld [vmem:[%s1266_s4] ss:$0 sm:$0xff]  ;;  %s931_s9 = sshll.u32 %s1020_s27, 4  ;;  %s932_s9 = int_to_ptr.vmem [resolvable:$false] %s931_s9 }
  0x54   : > { %738 = vmatprep.subr.mxu0 %v1018_v0  ;;  %749 = vmatprep.subr.mxu1 %v1018_v0  ;;  %v718_v38 = vld [vmem:[%s1268_s6] ss:$0 sm:$0xff]  ;;  %p929_p9 = pnand %p928_p8, %p1156_p7  ;;  %s933_s18 = scalar_lea.vmem %s932_s9, 256 }
  0x55   : > { %739 = vmatpush3.msra.mxu0 %v364_v3  ;;  %750 = vmatpush3.msra.mxu1 %v488_v20  ;;  %p934_p2 = scmp.lt.s32.totalorder %s589_s17, %s932_s9  ;;  %p935_p13 = scmp.lt.s32.totalorder %s933_s18, %s927_s5 }
  0x56   : > { %740 = vmatprep.subr.mxu0 %v1018_v0  ;;  %751 = vmatprep.subr.mxu1 %v1018_v0  ;;  %p930_p11 = pneg %p929_p9 }
  0x57   : > { %741 = vmatpush3.msra.mxu0 %v363_v4  ;;  %752 = vmatpush3.msra.mxu1 %v487_v21  ;;  %p936_p0 = por %p935_p13, %p934_p2 }
  0x58   : > { %743 = vmatmul.mubr.msk.f32.vlgmr.msra.gmra.mxu0 %vm374_vm1, %v362_v5 }
  0x59   : > { %p937_p5 = pnand %p936_p0, %p930_p11 }
 0x118   : > { %v444_v7 = vpop.f32.mrf.mxu0 }
 0x119   : > { %v445_v8 = vadd.f32 %v714_v6, %v444_v7 }
 0x11a   : > { %v744_v9 = vpop.f32.mrf.mxu0 }
 0x11b   : > { %v449_v10 = vmul.f32 0.70710677, %v445_v8  ;;  %v448_v12 = vmul.f32 0.5, %v445_v8 }
 0x11d   : > { %843 = verf.f32 %v449_v10 }
 0x12a   : > { %v844_v11 = vpop.eup %843 }
 0x12b   : > { %v451_v13 = vadd.f32 1.0, %v844_v11 }
 0x12d   : > { %v452_v14 = vmul.f32 %v451_v13, %v448_v12 }
 0x12f   : > { %v453_v15 = vsel %vm374_vm1, %v452_v14, 0.0  ;;  %v456_v16 = vmul.f32 %v452_v14, %v452_v14 }
 0x130   : > { %454 = vadd.xlane.f32.xlu0 %v453_v15 }
 0x131   : > { %v457_v17 = vsel %vm374_vm1, %v456_v16, 0.0 }
 0x134   : > { %458 = vadd.xlane.f32.xlu0 %v457_v17 }
 0x1b9   : > { %v455_v22 = vpop.xlane.xlu0 %454 }
 0x1ba   : > { %v460_v23 = vmul.f32 0.03125, %v455_v22 }
 0x1bc   : > { %v462_v25 = vmul.f32 %v460_v23, %v460_v23  ;;  %v465_v30 = vsub.f32 %v452_v14, %v460_v23 }
 0x1bd   : > { %v459_v24 = vpop.xlane.xlu0 %458 }
 0x1be   : > { %v461_v26 = vmul.f32 0.03125, %v459_v24 }
 0x1c0   : > { %v463_v27 = vsub.f32 %v461_v26, %v462_v25 }
 0x1c2   : > { %v464_v28 = vmax.f32 %v463_v27, 0.0 }
 0x1c4   : > { %v466_v29 = vadd.f32 1e-12, %v464_v28 }
 0x1c6   : > { %845 = vrsqrt.f32 %v466_v29 }
 0x1d3   : > { %v846_v31 = vpop.eup %845 }
 0x1d4   : > { %v468_v33 = vmul.f32 %v846_v31, %v465_v30 }
 0x1d6   : > { %v476_v35 = vmul.f32 %v716_v32, %v468_v33 }
 0x1d8   : > { %v484_v36 = vadd.f32 %v717_v34, %v476_v35 }
 0x1da   : > { %485 = vst.msk [vmem:[#allocation2] sm:$0xff] %vm374_vm1, %v484_v36 }
 0x1e1   : > { %v486_v37 = vld [vmem:[#allocation2] sm:$0xff] }
 0x1e2   : > { %754 = vmatmul.mubr.msk.f32.vlgmr.msra.gmra.mxu1 %vm374_vm1, %v486_v37 }
 0x2a2   : > { %v568_v39 = vpop.f32.mrf.mxu1 }
 0x2a3   : > { %v569_v40 = vadd.f32 %v718_v38, %v568_v39 }
 0x2a4   : > { %v755_v41 = vpop.f32.mrf.mxu1 }
 0x2a5   : > { %572 = vst [vmem:[%s354_s19] sm:$0xff] %v569_v40 }
 0x2a6   : > { %940 = shalt.err (!%p937_p5)
}
 0x2a7   : > { %s941_s11 = scalar_lea.hbm %s1220_s15, 128  ;;  %s945_s30 = scalar_lea.hbm %s1269_s7, 256 }
 0x2a8   : > { %p942_p10 = scmp.ne.s32.totalorder %s1220_s15, %s941_s11  ;;  %p946_p6 = scmp.lt.s32.totalorder %s1220_s15, %s1269_s7 }
 0x2a9   : > { %p947_p12 = scmp.lt.s32.totalorder %s945_s30, %s941_s11 }
 0x2aa   : > { %p943_p1 = pnand %p942_p10, %p1156_p7 }
 0x2ab   : > { %p948_p3 = por %p947_p12, %p946_p6 }
 0x2ac   : > { %p944_p4 = pneg %p943_p1 }
 0x2ae   : > { %p949_p8 = pnand %p948_p3, %p944_p4 }
 0x2b0   : > { %952 = shalt.err (!%p949_p8)
}
 0x2b1   : > { %766 = dma.vmem_to_hbm [thread:$0]  (%p1156_p7), %s589_s17, 128, %s1220_s15, %s574_s1  }
 0x2b2 PF: > { %s600_s10 = sand.u32 1, %s991_s24   ;;  %p1289_p9 = scmp.ne.s32.totalorder %s1279_s12, 0 }
 0x2b3   : > { %p1290_p11 = scmp.ge.s32.totalorder %s1011_s29, 2  ;;  %s601_s19 = scalar_lea.sflag [#allocation5], %s600_s10 }
 0x2b5   : > { %p780_p2 = pnand %p1290_p11, %p1289_p9 }
 0x2b7   : > { %p781_p13 = pneg %p780_p2 }
 0x2b9   : > { %986 = dma.done.wait (%p781_p13), %s601_s19, 128  }
 0x2ba   : > { %988 = vsyncadd (%p781_p13), %s601_s19, 4294967168  ;;  %s24_s29 = sadd.s32 1, %s1011_s29   ;;  %s1291_s16 = sld [smem:[#allocation13_spill]] }
 0x2bb   : > { %p21_p0 = scmp.ge.s32.totalorder %s24_s29, 4   ;;  %s1292_s24 = smov %s995_s25 }
 0x2bc   : > { %s1293_s25 = smov %s999_s26  ;;  %s1294_s26 = smov %s1165_s21 }
 0x2bd   : > { %s1295_s27 = smov %s1007_s28  ;;  %23 = sbr.rel (!%p21_p0) target bundleno = 10 (0xa), region = 109 }
 0x2c0   : > { %s1296_s28 = smov %s1291_s16 }
 0x2c2   :  { %606 = vsyncpa [#allocation4], 1 }
 0x2c3   :  { %608 = vsyncpa [#allocation4 + $0x1], 1 }
 0x2c4   :  { %609 = vsyncpa [#allocation7], 1 }
 0x2c5   :  { %610 = vsyncpa [#allocation5], 1 }
 0x2c6   :  { %612 = vsyncpa [#allocation5 + $0x1], 1 }

// kernel: tpu_custom_call.1
= control target key start
LH: loop header
LB: loop body
LE: loop exit
PB: predicated region body
PF: predicated region fallthrough
CT: control target
= control target key end

     0   :  { %s1262_s0 = inlined_call_operand.hbm [shape: f32[16,32], index: 0, kind: input, shape index: {}]   ;;  %s1263_s1 = inlined_call_operand.hbm [shape: f32[32,32], index: 1, kind: input, shape index: {}]   ;;  %s1264_s2 = inlined_call_operand.vmem [shape: f32[1,32], index: 2, kind: input, shape index: {}]   ;;  %s1265_s3 = inlined_call_operand.vmem [shape: f32[1,32], index: 3, kind: input, shape index: {}]   ;;  %s1266_s4 = inlined_call_operand.vmem [shape: f32[1,32], index: 4, kind: input, shape index: {}]   ;;  %s1267_s5 = inlined_call_operand.hbm [shape: f32[32,128], index: 5, kind: input, shape index: {}]   ;;  %s1268_s6 = inlined_call_operand.vmem [shape: f32[1,128], index: 6, kind: input, shape index: {}]   ;;  %s1269_s7 = inlined_call_operand.hbm [shape: f32[16,128], index: 7, kind: output, shape index: {}]  }
   0x1   :  { %1274 = sst [smem:[#allocation14_spill]] %s1263_s1 }
   0x2   :  { %1275 = sst [smem:[#allocation15_spill]] %s1267_s5 }
   0x3   :  { %12 = vsyncpa [#allocation4], 0 }
   0x4   :  { %14 = vsyncpa [#allocation4 + $0x1], 0 }
   0x5   :  { %15 = vsyncpa [#allocation7], 0 }
   0x6   :  { %16 = vsyncpa [#allocation5], 0 }
   0x7   :  { %18 = vsyncpa [#allocation5 + $0x1], 0  ;;  %s1061_s24 = smov 0   ;;  %s1063_s25 = smov 0  }
   0x8   :  { %s1065_s26 = smov 0   ;;  %s1067_s27 = smov 0  }
   0x9   :  { %s1069_s28 = smov 0   ;;  %s1071_s29 = smov 0  }
   0xa LB: > { %s700_s30 = sadd.s32 4294967295, %s1011_s29   ;;  %s701_s8 = sadd.s32 4294967294, %s1011_s29   ;;  %s1011_s29 = sphi %s1071_s29, %s24_s29   ;;  %s1007_s28 = sphi %s1069_s28, %s1296_s28   ;;  %s1003_s27 = sphi %s1067_s27, %s1295_s27   ;;  %s999_s26 = sphi %s1065_s26, %s1294_s26   ;;  %s995_s25 = sphi %s1063_s25, %s1293_s25   ;;  %s991_s24 = sphi %s1061_s24, %s1292_s24  }
   0xb   : > { %p56_p0 = scmp.ne.s32.totalorder %s995_s25, %s991_s24  ;;  %p1095_p1 = scmp.eq.s32.totalorder %s700_s30, 0 }
   0xc   : > { %p1099_p2 = scmp.eq.s32.totalorder %s700_s30, 1  ;;  %p224_p3 = scmp.eq.s32.totalorder %s701_s8, 1 }
   0xd   : > { %s1276_s9 = scalar_select %p1095_p1, 1, 0 }
   0xe   : > { %p1105_p4 = por %p1095_p1, %p56_p0  ;;  %p702_p5 = scmp.ge.s32.totalorder %s1011_s29, 1 }
   0xf   : > { %p1110_p6 = por %p224_p3, %p56_p0  ;;  %p231_p7 = scmp.lt.s32.totalorder %s1011_s29, 3 }
  0x10   : > { %s1278_s11 = scalar_select %p1105_p4, 1, 0 }
  0x11   : > { %s1279_s12 = scalar_select %p1110_p6, 1, 0 }
  0x12   : > { %p1115_p8 = pnand %p702_p5, %p231_p7  ;;  %s1013_s14 = smov [#allocation6]  }
  0x13   : > { %s243_s15 = sshll.u32 %s1013_s14, 4  ;;  %s1014_s17 = smov [#allocation8]   ;;  %s244_s15 = int_to_ptr.vmem [resolvable:$true] %s243_s15 }
  0x14   : > { %p768_p9 = pneg %p1115_p8  ;;  %s267_s18 = sshll.u32 %s1014_s17, 4  ;;  %s268_s18 = int_to_ptr.vmem [resolvable:$true] %s267_s18 }
  0x15   : > { %s858_s19 = scalar_lea.vmem %s244_s15, 512  ;;  %p866_p5 = scmp.lt.s32.totalorder %s244_s15, %s244_s15 }
  0x16   : > { %p1124_p11 = pnand %p768_p9, %p1095_p1  ;;  %p859_p13 = scmp.ne.s32.totalorder %s244_s15, %s858_s19 }
  0x17   : > { %p867_p7 = scmp.lt.s32.totalorder %s858_s19, %s858_s19 }
  0x18   : > { %p849_p12 = pneg %p1124_p11 }
  0x19   : > { %p868_p10 = por %p867_p7, %p866_p5 }
  0x1a   : > { %p861_p0 = pnand %p859_p13, %p849_p12 }
  0x1c   : > { %p862_p3 = pneg %p861_p0 }
  0x1e   : > { %p869_p9 = pnand %p868_p10, %p862_p3 }
  0x20   : > { %872 = shalt.err (!%p869_p9)
}
  0x21   : > { %s1015_s20 = smov 128   ;;  %s1016_s21 = smov 8  }
  0x22   : > { %s1282_s1 = sld [smem:[#allocation14_spill]]  ;;  %s884_s30 = scalar_lea.vmem %s268_s18, 512 }
  0x23   : > { %p885_p6 = scmp.ne.s32.totalorder %s268_s18, %s884_s30  ;;  %p892_p1 = scmp.lt.s32.totalorder %s268_s18, %s268_s18 }
  0x24   : > { %p893_p4 = scmp.lt.s32.totalorder %s884_s30, %s884_s30 }
  0x25   : > { %p887_p13 = pnand %p885_p6, %p849_p12 }
  0x26   : > { %p894_p5 = por %p893_p4, %p892_p1 }
  0x27   : > { %p888_p0 = pneg %p887_p13 }
  0x28   : > { %771 = dma.hbm_to_vmem [thread:$0]  (!%p1124_p11), %s1282_s1, 512, %s244_s15, [#allocation7], %s1015_s20, %s1015_s20, %s1016_s21  }
  0x29   : > { %p895_p10 = pnand %p894_p5, %p888_p0 }
  0x2b   : > { %898 = shalt.err (!%p895_p10)
}
  0x2c   : > { %s1283_s5 = sld [smem:[#allocation15_spill]]  ;;  %s36_s15 = sadd.s32 1, %s1007_s28 }
  0x2d   : > { %s43_s17 = sadd.s32 1, %s999_s26  ;;  %p38_p1 = scmp.ge.s32.totalorder %s36_s15, 2 }
  0x2e   : > { %p50_p4 = scmp.ne.s32.totalorder %s999_s26, %s995_s25  ;;  %p51_p6 = scmp.eq.s32.totalorder %s1011_s29, 0 }
  0x2f   : > { %p785_p12 = scmp.lt.s32.totalorder %s1011_s29, 2  ;;  %s1298_s15 = smov (%p38_p1, %s36_s15), 0 }
  0x30   : > { %1284 = sst [smem:[#allocation13_spill]] %s1298_s15  ;;  %p52_p3 = por %p51_p6, %p50_p4 }
  0x31   : > { %p1156_p7 = por %p1099_p2, %p50_p4  ;;  %s40_s19 = ssub.s32 %s1007_s28, %s1298_s15 }
  0x32   : > { %774 = dma.hbm_to_vmem [thread:$0]  (!%p1124_p11), %s1283_s5, 512, %s268_s18, [#allocation7], %s1015_s20, %s1015_s20, %s1016_s21  }
  0x33   : > { %s287_s22 = sand.u32 1, %s999_s26   ;;  %p41_p9 = scmp.eq.s32.totalorder %s40_s19, 0 }
  0x34   : > { %s707_s18 = sshll.u32 %s287_s22, 3  ;;  %s708_s20 = sshll.u32 %s1007_s28, 7 }
  0x35   : > { %s1165_s21 = scalar_select %p41_p9, %s999_s26, %s43_s17  }
  0x36   : > { %s296_s8 = scalar_lea.hbm %s1262_s0, %s708_s20  ;;  %s291_s14 = scalar_lea.vmem [#allocation3], %s707_s18 }
  0x37   : > { %s298_s1 = sshll.u32 %s291_s14, 4  ;;  %p1172_p11 = pnand %p785_p12, %p52_p3  ;;  %s299_s1 = int_to_ptr.vmem [resolvable:$true] %s298_s1 }
  0x38   : > { %s288_s5 = scalar_lea.sflag [#allocation4], %s287_s22  ;;  %s912_s19 = scalar_lea.vmem %s299_s1, 128 }
  0x39   : > { %p901_p2 = pneg %p1172_p11  ;;  %p913_p13 = scmp.ne.s32.totalorder %s299_s1, %s912_s19 }
  0x3a   : > { %s1017_s17 = smov [#allocation3]  }
  0x3b   : > { %p915_p0 = pnand %p913_p13, %p901_p2  ;;  %s917_s15 = sshll.u32 %s1017_s17, 4  ;;  %s918_s15 = int_to_ptr.vmem [resolvable:$false] %s917_s15 }
  0x3c   : > { %s919_s20 = scalar_lea.vmem %s918_s15, 256  ;;  %p920_p10 = scmp.lt.s32.totalorder %s299_s1, %s918_s15 }
  0x3d   : > { %p916_p5 = pneg %p915_p0  ;;  %p921_p1 = scmp.lt.s32.totalorder %s919_s20, %s912_s19 }
  0x3f   : > { %p922_p4 = por %p921_p1, %p920_p10 }
  0x41   : > { %p923_p6 = pnand %p922_p4, %p916_p5 }
  0x43   : > { %926 = shalt.err (!%p923_p6)
}
  0x44   : > { %778 = dma.hbm_to_vmem [thread:$0]  (!%p1172_p11), %s296_s8, 128, %s299_s1, %s288_s5  }
  0x45   : > { %307 = sbr.rel (%p1115_p8) target bundleno = 690 (0x2b2), region = 48  ;;  %s1183_s22 = sand.u32 (!%p1115_p8), 1, %s995_s25  }
  0x46   : > { %s710_s18 = sshll.u32 (!%p1115_p8), %s1183_s22, 3  ;;  %s310_s23 = scalar_lea.sflag (!%p1115_p8), [#allocation4], %s1183_s22 }
  0x47   : > { %s313_s15 = scalar_lea.vmem (!%p1115_p8), [#allocation3], %s710_s18  ;;  %p1287_p12 = scmp.ne.s32.totalorder (!%p1115_p8), %s1278_s11, 0 }
  0x4a   : > { %978 = dma.done.wait (%p1287_p12), %s310_s23, 128  }
  0x4b   : > { %980 = vsyncadd (%p1287_p12), %s310_s23, 4294967168  ;;  %p1288_p3 = scmp.ne.s32.totalorder %s1276_s9, 0 }
  0x4d   : > { %982 = dma.done.wait (%p1288_p3), [#allocation7], 1024  }
  0x4e   : > { %984 = vsyncadd (%p1288_p3), [#allocation7], 4294966272  ;;  %v1018_v0 = vmov 0.0   ;;  %vm1019_vm0 = vmmov 0   ;;  %v366_v1 = vld [vmem:[#allocation6 + $0x18] sm:$0xff]  ;;  %v365_v2 = vld [vmem:[#allocation6 + $0x10] sm:$0xff] }
  0x4f   : > { %734 = vmatprep.subr.mxu0 %v1018_v0  ;;  %742 = vmatprep.mubr.msk.f32.mxu0 %vm1019_vm0, %v1018_v0  ;;  %v364_v3 = vld [vmem:[#allocation6 + $0x8] sm:$0xff]  ;;  %v363_v4 = vld [vmem:[#allocation6] sm:$0xff]  ;;  %v362_v5 = vld [vmem:[%s313_s15] sm:$0xff]  ;;  %vm374_vm1 = vcmask 261120   ;;  %s721_s10 = sshll.u32 %s1003_s27, 7  ;;  %s354_s19 = scalar_lea.vmem [#allocation9], %s710_s18 }
  0x50   : > { %745 = vmatprep.subr.mxu1 %v1018_v0  ;;  %753 = vmatprep.mubr.msk.f32.mxu1 %vm1019_vm0, %v1018_v0  ;;  %v714_v6 = vld [vmem:[%s1264_s2] ss:$0 sm:$0xff]  ;;  %v490_v18 = vld [vmem:[#allocation8 + $0x18] sm:$0xff]  ;;  %v489_v19 = vld [vmem:[#allocation8 + $0x10] sm:$0xff]  ;;  %s588_s17 = sshll.u32 %s354_s19, 4  ;;  %s1220_s15 = scalar_lea.hbm %s1269_s7, %s721_s10  ;;  %s589_s17 = int_to_ptr.vmem [resolvable:$true] %s588_s17 }
  0x51   : > { %735 = vmatpush3.msra.mxu0 %v366_v1  ;;  %746 = vmatpush3.msra.mxu1 %v490_v18  ;;  %v488_v20 = vld [vmem:[#allocation8 + $0x8] sm:$0xff]  ;;  %v487_v21 = vld [vmem:[#allocation8] sm:$0xff]  ;;  %s574_s1 = scalar_lea.sflag [#allocation5], %s1183_s22  ;;  %s927_s5 = scalar_lea.vmem %s589_s17, 128 }
  0x52   : > { %736 = vmatprep.subr.mxu0 %v1018_v0  ;;  %747 = vmatprep.subr.mxu1 %v1018_v0  ;;  %v716_v32 = vld [vmem:[%s1265_s3] ss:$0 sm:$0xff]  ;;  %p928_p8 = scmp.ne.s32.totalorder %s589_s17, %s927_s5  ;;  %s1020_s27 = smov [#allocation9]  }
  0x53   : > { %737 = vmatpush3.msra.mxu0 %v365_v2  ;;  %748 = vmatpush3.msra.mxu1 %v489_v19  ;;  %v717_v34 = vld [vmem:[%s1266_s4] ss:$0 sm:$0xff]  ;;  %s931_s9 = sshll.u32 %s1020_s27, 4  ;;  %s932_s9 = int_to_ptr.vmem [resolvable:$false] %s931_s9 }
  0x54   : > { %738 = vmatprep.subr.mxu0 %v1018_v0  ;;  %749 = vmatprep.subr.mxu1 %v1018_v0  ;;  %v718_v38 = vld [vmem:[%s1268_s6] ss:$0 sm:$0xff]  ;;  %p929_p9 = pnand %p928_p8, %p1156_p7  ;;  %s933_s18 = scalar_lea.vmem %s932_s9, 256 }
  0x55   : > { %739 = vmatpush3.msra.mxu0 %v364_v3  ;;  %750 = vmatpush3.msra.mxu1 %v488_v20  ;;  %p934_p2 = scmp.lt.s32.totalorder %s589_s17, %s932_s9  ;;  %p935_p13 = scmp.lt.s32.totalorder %s933_s18, %s927_s5 }
  0x56   : > { %740 = vmatprep.subr.mxu0 %v1018_v0  ;;  %751 = vmatprep.subr.mxu1 %v1018_v0  ;;  %p930_p11 = pneg %p929_p9 }
  0x57   : > { %741 = vmatpush3.msra.mxu0 %v363_v4  ;;  %752 = vmatpush3.msra.mxu1 %v487_v21  ;;  %p936_p0 = por %p935_p13, %p934_p2 }
  0x58   : > { %743 = vmatmul.mubr.msk.f32.vlgmr.msra.gmra.mxu0 %vm374_vm1, %v362_v5 }
  0x59   : > { %p937_p5 = pnand %p936_p0, %p930_p11 }
 0x118   : > { %v444_v7 = vpop.f32.mrf.mxu0 }
 0x119   : > { %v445_v8 = vadd.f32 %v714_v6, %v444_v7 }
 0x11a   : > { %v744_v9 = vpop.f32.mrf.mxu0 }
 0x11b   : > { %v449_v10 = vmul.f32 0.70710677, %v445_v8  ;;  %v448_v12 = vmul.f32 0.5, %v445_v8 }
 0x11d   : > { %843 = verf.f32 %v449_v10 }
 0x12a   : > { %v844_v11 = vpop.eup %843 }
 0x12b   : > { %v451_v13 = vadd.f32 1.0, %v844_v11 }
 0x12d   : > { %v452_v14 = vmul.f32 %v451_v13, %v448_v12 }
 0x12f   : > { %v453_v15 = vsel %vm374_vm1, %v452_v14, 0.0  ;;  %v456_v16 = vmul.f32 %v452_v14, %v452_v14 }
 0x130   : > { %454 = vadd.xlane.f32.xlu0 %v453_v15 }
 0x131   : > { %v457_v17 = vsel %vm374_vm1, %v456_v16, 0.0 }
 0x134   : > { %458 = vadd.xlane.f32.xlu0 %v457_v17 }
 0x1b9   : > { %v455_v22 = vpop.xlane.xlu0 %454 }
 0x1ba   : > { %v460_v23 = vmul.f32 0.03125, %v455_v22 }
 0x1bc   : > { %v462_v25 = vmul.f32 %v460_v23, %v460_v23  ;;  %v465_v30 = vsub.f32 %v452_v14, %v460_v23 }
 0x1bd   : > { %v459_v24 = vpop.xlane.xlu0 %458 }
 0x1be   : > { %v461_v26 = vmul.f32 0.03125, %v459_v24 }
 0x1c0   : > { %v463_v27 = vsub.f32 %v461_v26, %v462_v25 }
 0x1c2   : > { %v464_v28 = vmax.f32 %v463_v27, 0.0 }
 0x1c4   : > { %v466_v29 = vadd.f32 1e-12, %v464_v28 }
 0x1c6   : > { %845 = vrsqrt.f32 %v466_v29 }
 0x1d3   : > { %v846_v31 = vpop.eup %845 }
 0x1d4   : > { %v468_v33 = vmul.f32 %v846_v31, %v465_v30 }
 0x1d6   : > { %v476_v35 = vmul.f32 %v716_v32, %v468_v33 }
 0x1d8   : > { %v484_v36 = vadd.f32 %v717_v34, %v476_v35 }
 0x1da   : > { %485 = vst.msk [vmem:[#allocation2] sm:$0xff] %vm374_vm1, %v484_v36 }
 0x1e1   : > { %v486_v37 = vld [vmem:[#allocation2] sm:$0xff] }
 0x1e2   : > { %754 = vmatmul.mubr.msk.f32.vlgmr.msra.gmra.mxu1 %vm374_vm1, %v486_v37 }
 0x2a2   : > { %v568_v39 = vpop.f32.mrf.mxu1 }
 0x2a3   : > { %v569_v40 = vadd.f32 %v718_v38, %v568_v39 }
 0x2a4   : > { %v755_v41 = vpop.f32.mrf.mxu1 }
 0x2a5   : > { %572 = vst [vmem:[%s354_s19] sm:$0xff] %v569_v40 }
 0x2a6   : > { %940 = shalt.err (!%p937_p5)
}
 0x2a7   : > { %s941_s11 = scalar_lea.hbm %s1220_s15, 128  ;;  %s945_s30 = scalar_lea.hbm %s1269_s7, 256 }
 0x2a8   : > { %p942_p10 = scmp.ne.s32.totalorder %s1220_s15, %s941_s11  ;;  %p946_p6 = scmp.lt.s32.totalorder %s1220_s15, %s1269_s7 }
 0x2a9   : > { %p947_p12 = scmp.lt.s32.totalorder %s945_s30, %s941_s11 }
 0x2aa   : > { %p943_p1 = pnand %p942_p10, %p1156_p7 }
 0x2ab   : > { %p948_p3 = por %p947_p12, %p946_p6 }
 0x2ac   : > { %p944_p4 = pneg %p943_p1 }
 0x2ae   : > { %p949_p8 = pnand %p948_p3, %p944_p4 }
 0x2b0   : > { %952 = shalt.err (!%p949_p8)
}
 0x2b1   : > { %766 = dma.vmem_to_hbm [thread:$0]  (%p1156_p7), %s589_s17, 128, %s1220_s15, %s574_s1  }
 0x2b2 PF: > { %s600_s10 = sand.u32 1, %s991_s24   ;;  %p1289_p9 = scmp.ne.s32.totalorder %s1279_s12, 0 }
 0x2b3   : > { %p1290_p11 = scmp.ge.s32.totalorder %s1011_s29, 2  ;;  %s601_s19 = scalar_lea.sflag [#allocation5], %s600_s10 }
 0x2b5   : > { %p780_p2 = pnand %p1290_p11, %p1289_p9 }
 0x2b7   : > { %p781_p13 = pneg %p780_p2 }
 0x2b9   : > { %986 = dma.done.wait (%p781_p13), %s601_s19, 128  }
 0x2ba   : > { %988 = vsyncadd (%p781_p13), %s601_s19, 4294967168  ;;  %s24_s29 = sadd.s32 1, %s1011_s29   ;;  %s1291_s16 = sld [smem:[#allocation13_spill]] }
 0x2bb   : > { %p21_p0 = scmp.ge.s32.totalorder %s24_s29, 4   ;;  %s1292_s24 = smov %s995_s25 }
 0x2bc   : > { %s1293_s25 = smov %s999_s26  ;;  %s1294_s26 = smov %s1165_s21 }
 0x2bd   : > { %s1295_s27 = smov %s1007_s28  ;;  %23 = sbr.rel (!%p21_p0) target bundleno = 10 (0xa), region = 109 }
 0x2c0   : > { %s1296_s28 = smov %s1291_s16 }
 0x2c2   :  { %606 = vsyncpa [#allocation4], 1 }
 0x2c3   :  { %608 = vsyncpa [#allocation4 + $0x1], 1 }
 0x2c4   :  { %609 = vsyncpa [#allocation7], 1 }
 0x2c5   :  { %610 = vsyncpa [#allocation5], 1 }
 0x2c6   :  { %612 = vsyncpa [#allocation5 + $0x1], 1 }

</bundles_post_ra>
